<compile_context>
chip_gen: v6e
topology: v6e:2x2x1
jax: 0.10.0
libtpu: 0.0.40
codegen_flags: <defaults>
</compile_context>

<pallas_src>
import functools

import jax
import jax.numpy as jnp
from jax import lax
from jax.experimental import pallas as pl
from jax.experimental.pallas import tpu as pltpu

K_SIZE = 5
PAD = (K_SIZE - 1) // 2


def _eca_kernel(x_ref, len_ref, inv_ref, w_ref, o_ref):
    """One grid step == one tile of bb batch rows.

    x_ref   : VMEM      (bb, E, T)   input tile (f32 or bf16)
    len_ref : VMEM i32  (bb, 1, 1)   valid length per batch row (clamped >= 1)
    inv_ref : VMEM f32  (bb, 1, 1)   1 / length per batch row
    w_ref   : SMEM f32  (K,)         Conv1d(1, 1, K, bias=False) taps
    o_ref   : VMEM      (bb, E, T)   output tile (same dtype as x)
    """
    bb, E, T = x_ref.shape

    x = x_ref[...]                                        # native dtype (bb, E, T)
    xf = x.astype(jnp.float32)

    # Time mask built in-kernel (no (B, T) mask array streamed from HBM).
    t_idx = lax.broadcasted_iota(jnp.int32, (bb, 1, T), 2)
    mask = t_idx < len_ref[...]                           # (bb, 1, T), broadcast over E

    # Masked temporal mean, accumulated in f32; result lane-dense (bb, E).
    y = jnp.sum(jnp.where(mask, xf, 0.0), axis=2) * inv_ref[:, :, 0]   # (bb, E)

    # Channel conv: value-level zero pad along lanes + K shifted FMAs (VPU/XLU).
    zpad = jnp.zeros((bb, PAD), jnp.float32)
    yp = jnp.concatenate([zpad, y, zpad], axis=1)         # (bb, E + 2*PAD)
    conv = w_ref[0] * yp[:, 0:E]
    for j in range(1, K_SIZE):                            # static unroll, K = 5
        conv = conv + w_ref[j] * yp[:, j:j + E]

    gate = jax.nn.sigmoid(conv)[:, :, None]               # (bb, E, 1) f32

    # Gated broadcast multiply in the I/O dtype (no full f32 copy on the store path).
    o_ref[...] = (x * gate.astype(x.dtype)).astype(o_ref.dtype)


@functools.partial(jax.jit, static_argnames=("block_bytes_target",))
def eca_layer(x, lengths, conv_w, *, block_bytes_target=4 * 1024 * 1024):
    """x: (B, E, T) f32/bf16; lengths: int (B,); conv_w: f32 (K,)."""
    B, E, T = x.shape
    itemsize = jnp.dtype(x.dtype).itemsize
    row_bytes = E * T * itemsize
    row_f32 = E * T * 4

    # Estimated VMEM per batch row: double-buffered input + output blocks plus
    # in-kernel f32 temporaries.  Keep the total under ~40 MiB so the kernel
    # also fits v7x's 64 MiB per-TensorCore VMEM with headroom.
    vmem_per_row = 4 * row_bytes + 3 * row_f32
    max_rows = max(1, (40 * 1024 * 1024) // max(vmem_per_row, 1))
    target_rows = max(1, min(block_bytes_target // max(row_bytes, 1), max_rows))

    # Largest divisor of B that fits the target: no padded copy of x is ever
    # needed, and the grid tiles B exactly.
    bb = 1
    d = 1
    limit = min(B, target_rows)
    while d <= limit:
        if B % d == 0:
            bb = d
        d += 1
    n_blocks = B // bb
    # TODO(synk): add a T-chunked two-pass fallback for rows so large that a
    # single (1, E, T) block cannot be double-buffered in VMEM (v7x, 64 MiB).

    lengths = jnp.maximum(lengths.astype(jnp.int32), 1)   # guard length == 0
    len_i = lengths.reshape(B, 1, 1)                                       # i32
    inv_len = (1.0 / lengths.astype(jnp.float32)).reshape(B, 1, 1)          # f32

    out = pl.pallas_call(
        _eca_kernel,
        out_shape=jax.ShapeDtypeStruct((B, E, T), x.dtype),
        grid_spec=pltpu.PrefetchScalarGridSpec(
            num_scalar_prefetch=0,
            grid=(n_blocks,),
            in_specs=[
                pl.BlockSpec((bb, E, T), lambda i: (i, 0, 0)),
                pl.BlockSpec((bb, 1, 1), lambda i: (i, 0, 0)),
                pl.BlockSpec((bb, 1, 1), lambda i: (i, 0, 0)),
                pl.BlockSpec(memory_space=pltpu.MemorySpace.SMEM),
            ],
            out_specs=pl.BlockSpec((bb, E, T), lambda i: (i, 0, 0)),
        ),
        compiler_params=pltpu.CompilerParams(
            dimension_semantics=("parallel",),
            vmem_limit_bytes=48 * 1024 * 1024,
        ),
    )(x, len_i, inv_len, conv_w.astype(jnp.float32))

    return out


def eca_reference(x, lengths, conv_w):
    """Pure-JAX reference mirroring the PyTorch forward."""
    B, E, T = x.shape
    L = jnp.maximum(lengths.astype(jnp.int32), 1)
    xf = x.astype(jnp.float32)
    mask = jnp.arange(T)[None, None, :] < L[:, None, None]
    y = jnp.sum(jnp.where(mask, xf, 0.0), axis=2) / L[:, None].astype(jnp.float32)
    ypad = jnp.pad(y, ((0, 0), (PAD, PAD)))
    conv = jnp.zeros_like(y)
    for j in range(K_SIZE):
        conv = conv + conv_w[j] * ypad[:, j:j + E]
    gate = jax.nn.sigmoid(conv)
    return (xf * gate[:, :, None]).astype(x.dtype)


if __name__ == "__main__":
    key = jax.random.PRNGKey(0)
    kx, kw, kx2 = jax.random.split(key, 3)

    # Deterministic Conv1d(1, 1, 5, bias=False)-style weight.
    bound = 1.0 / (1 * K_SIZE) ** 0.5
    conv_w = jax.random.uniform(kw, (K_SIZE,), jnp.float32, -bound, bound)

    # Case 1: f32, lane-dense T (multiple of 128), single-step grid.
    B, E, T = 2, 16, 128
    x = jax.random.normal(kx, (B, E, T), dtype=jnp.float32)
    lengths = jnp.array([100, 57], dtype=jnp.int32)
    out = jax.block_until_ready(eca_layer(x, lengths, conv_w))
    ref = eca_reference(x, lengths, conv_w)
    assert out.shape == (B, E, T)
    assert jnp.allclose(out, ref, atol=1e-5, rtol=1e-5), "f32 mismatch vs reference"

    # Case 2: small block target forces bb=1 -> 5-step grid (no x padding ever).
    B2 = 5
    x2 = jax.random.normal(kx2, (B2, E, T), dtype=jnp.float32)
    lengths2 = jnp.array([128, 3, 77, 1, 60], dtype=jnp.int32)
    out2 = jax.block_until_ready(
        eca_layer(x2, lengths2, conv_w, block_bytes_target=E * T * 4))
    ref2 = eca_reference(x2, lengths2, conv_w)
    assert jnp.allclose(out2, ref2, atol=1e-5, rtol=1e-5), "multi-step grid mismatch"

    # Case 3: bf16 I/O (halves HBM traffic; reduction in f32, gated mul in bf16).
    xb = x.astype(jnp.bfloat16)
    outb = jax.block_until_ready(eca_layer(xb, lengths, conv_w))
    refb = eca_reference(xb, lengths, conv_w)
    assert outb.dtype == jnp.bfloat16
    assert jnp.allclose(outb.astype(jnp.float32), refb.astype(jnp.float32),
                        atol=2e-2, rtol=2e-2), "bf16 mismatch vs reference"

    print("KERNEL_OK")
</pallas_src>

<mosaic_0001>
module attributes {stable_mosaic.version = 11 : i64} {
  func.func @_eca_kernel(%arg0: i32, %arg1: memref<2x16x128xf32, #tpu.memory_space<vmem>>, %arg2: memref<2x1x1xi32, #tpu.memory_space<vmem>>, %arg3: memref<2x1x1xf32, #tpu.memory_space<vmem>>, %arg4: memref<5xf32, #tpu.memory_space<smem>>, %arg5: memref<2x16x128xf32, #tpu.memory_space<vmem>>) attributes {dimension_semantics = [#tpu.dimension_semantics<parallel>], iteration_bounds = array<i64: 1>, scalar_prefetch = 0 : i64, scratch_operands = 0 : i64, tpu.core_type = #tpu.core_type<tc>, window_params = [{transform_indices = @transform_0, window_bounds = array<i64: 2, 16, 128>}, {transform_indices = @transform_1, window_bounds = array<i64: 2, 1, 1>}, {transform_indices = @transform_2, window_bounds = array<i64: 2, 1, 1>}, {transform_indices = @transform_3, window_bounds = array<i64: 5>}, {transform_indices = @transform_4, window_bounds = array<i64: 2, 16, 128>}]} {
    %c0 = arith.constant 0 : index
    %c0_0 = arith.constant 0 : index
    %c0_1 = arith.constant 0 : index
    %0 = vector.load %arg1[%c0, %c0_0, %c0_1] : memref<2x16x128xf32, #tpu.memory_space<vmem>>, vector<2x16x128xf32>
    %1 = tpu.iota {dimensions = array<i32: 2>} : vector<2x1x128xi32>
    %c0_2 = arith.constant 0 : index
    %c0_3 = arith.constant 0 : index
    %c0_4 = arith.constant 0 : index
    %2 = vector.load %arg2[%c0_2, %c0_3, %c0_4] : memref<2x1x1xi32, #tpu.memory_space<vmem>>, vector<2x1x1xi32>
    %3 = vector.broadcast %2 : vector<2x1x1xi32> to vector<2x1x128xi32>
    %4 = arith.cmpi slt, %1, %3 : vector<2x1x128xi32>
    %cst = arith.constant 0.000000e+00 : f32
    %5 = vector.shape_cast %4 : vector<2x1x128xi1> to vector<2x1x128xi1>
    %6 = vector.broadcast %5 : vector<2x1x128xi1> to vector<2x16x128xi1>
    %7 = vector.broadcast %cst : f32 to vector<2x16x128xf32>
    %8 = arith.select %6, %0, %7 : vector<2x16x128xi1>, vector<2x16x128xf32>
    %cst_5 = arith.constant dense<0.000000e+00> : vector<2x16xf32>
    %9 = vector.multi_reduction <add>, %8, %cst_5 [2] : vector<2x16x128xf32> to vector<2x16xf32>
    %c0_6 = arith.constant 0 : index
    %c0_7 = arith.constant 0 : index
    %c0_8 = arith.constant 0 : index
    %10 = vector.load %arg3[%c0_6, %c0_7, %c0_8] : memref<2x1x1xf32, #tpu.memory_space<vmem>>, vector<2x1x1xf32>
    %11 = vector.shape_cast %10 : vector<2x1x1xf32> to vector<2x1xf32>
    %12 = vector.broadcast %11 : vector<2x1xf32> to vector<2x16xf32>
    %13 = arith.mulf %9, %12 : vector<2x16xf32>
    %cst_9 = arith.constant 0.000000e+00 : f32
    %14 = vector.broadcast %cst_9 : f32 to vector<2x2xf32>
    %15 = tpu.concatenate %14, %13, %14 in 1 : vector<2x2xf32>, vector<2x16xf32>, vector<2x2xf32> -> vector<2x20xf32>
    %c0_10 = arith.constant 0 : index
    %16 = memref.load %arg4[%c0_10] : memref<5xf32, #tpu.memory_space<smem>>
    %17 = vector.extract_strided_slice %15 {offsets = [0, 0], sizes = [2, 16], strides = [1, 1]} : vector<2x20xf32> to vector<2x16xf32>
    %18 = vector.broadcast %16 : f32 to vector<2x16xf32>
    %19 = arith.mulf %18, %17 : vector<2x16xf32>
    %c1 = arith.constant 1 : index
    %20 = memref.load %arg4[%c1] : memref<5xf32, #tpu.memory_space<smem>>
    %21 = vector.extract_strided_slice %15 {offsets = [0, 1], sizes = [2, 16], strides = [1, 1]} : vector<2x20xf32> to vector<2x16xf32>
    %22 = vector.broadcast %20 : f32 to vector<2x16xf32>
    %23 = arith.mulf %22, %21 : vector<2x16xf32>
    %24 = arith.addf %19, %23 : vector<2x16xf32>
    %c2 = arith.constant 2 : index
    %25 = memref.load %arg4[%c2] : memref<5xf32, #tpu.memory_space<smem>>
    %26 = vector.extract_strided_slice %15 {offsets = [0, 2], sizes = [2, 16], strides = [1, 1]} : vector<2x20xf32> to vector<2x16xf32>
    %27 = vector.broadcast %25 : f32 to vector<2x16xf32>
    %28 = arith.mulf %27, %26 : vector<2x16xf32>
    %29 = arith.addf %24, %28 : vector<2x16xf32>
    %c3 = arith.constant 3 : index
    %30 = memref.load %arg4[%c3] : memref<5xf32, #tpu.memory_space<smem>>
    %31 = vector.extract_strided_slice %15 {offsets = [0, 3], sizes = [2, 16], strides = [1, 1]} : vector<2x20xf32> to vector<2x16xf32>
    %32 = vector.broadcast %30 : f32 to vector<2x16xf32>
    %33 = arith.mulf %32, %31 : vector<2x16xf32>
    %34 = arith.addf %29, %33 : vector<2x16xf32>
    %c4 = arith.constant 4 : index
    %35 = memref.load %arg4[%c4] : memref<5xf32, #tpu.memory_space<smem>>
    %36 = vector.extract_strided_slice %15 {offsets = [0, 4], sizes = [2, 16], strides = [1, 1]} : vector<2x20xf32> to vector<2x16xf32>
    %37 = vector.broadcast %35 : f32 to vector<2x16xf32>
    %38 = arith.mulf %37, %36 : vector<2x16xf32>
    %39 = arith.addf %34, %38 : vector<2x16xf32>
    %40 = arith.negf %39 : vector<2x16xf32>
    %41 = math.exp %40 : vector<2x16xf32>
    %cst_11 = arith.constant 1.000000e+00 : f32
    %42 = vector.broadcast %cst_11 : f32 to vector<2x16xf32>
    %43 = arith.addf %42, %41 : vector<2x16xf32>
    %44 = arith.divf %42, %43 : vector<2x16xf32>
    %45 = vector.shape_cast %44 : vector<2x16xf32> to vector<2x16x1xf32>
    %46 = vector.broadcast %45 : vector<2x16x1xf32> to vector<2x16x128xf32>
    %47 = arith.mulf %0, %46 : vector<2x16x128xf32>
    %c0_12 = arith.constant 0 : index
    %c0_13 = arith.constant 0 : index
    %c0_14 = arith.constant 0 : index
    %48 = vector.load %arg5[%c0_12, %c0_13, %c0_14] : memref<2x16x128xf32, #tpu.memory_space<vmem>>, vector<2x16x128xf32>
    tpu.vector_store %arg5[%c0_12, %c0_13, %c0_14], %47 {strides = array<i32>} : memref<2x16x128xf32, #tpu.memory_space<vmem>>, vector<2x16x128xf32>,
    return
  }
  func.func @transform_0(%arg0: i32) -> (i32, i32, i32) {
    %c0_i32 = arith.constant 0 : i32
    %c0_i32_0 = arith.constant 0 : i32
    %c0_i32_1 = arith.constant 0 : i32
    return %arg0, %c0_i32, %c0_i32_0 : i32, i32, i32
  }
  func.func @transform_1(%arg0: i32) -> (i32, i32, i32) {
    %c0_i32 = arith.constant 0 : i32
    %c0_i32_0 = arith.constant 0 : i32
    %c0_i32_1 = arith.constant 0 : i32
    return %arg0, %c0_i32, %c0_i32_0 : i32, i32, i32
  }
  func.func @transform_2(%arg0: i32) -> (i32, i32, i32) {
    %c0_i32 = arith.constant 0 : i32
    %c0_i32_0 = arith.constant 0 : i32
    %c0_i32_1 = arith.constant 0 : i32
    return %arg0, %c0_i32, %c0_i32_0 : i32, i32, i32
  }
  func.func @transform_3(%arg0: i32) -> i32 {
    %c0_i32 = arith.constant 0 : i32
    %c0_i32_0 = arith.constant 0 : i32
    return %c0_i32 : i32
  }
  func.func @transform_4(%arg0: i32) -> (i32, i32, i32) {
    %c0_i32 = arith.constant 0 : i32
    %c0_i32_0 = arith.constant 0 : i32
    %c0_i32_1 = arith.constant 0 : i32
    return %arg0, %c0_i32, %c0_i32_0 : i32, i32, i32
  }
}

</mosaic_0001>

<bundles_post_ra>
// kernel: eca_layer.1
= control target key start
LH: loop header
LB: loop body
LE: loop exit
PB: predicated region body
PF: predicated region fallthrough
CT: control target
= control target key end

     0   :  { %9 = vsyncpa [#allocation3], 0  ;;  %s463_s0 = inlined_call_operand.hbm [shape: f32[2,16,128], index: 0, kind: input, shape index: {}]   ;;  %s464_s1 = inlined_call_operand.vmem [shape: s32[2,1,1], index: 1, kind: input, shape index: {}]   ;;  %s465_s2 = inlined_call_operand.vmem [shape: f32[2,1,1], index: 2, kind: input, shape index: {}]   ;;  %s466_s3 = inlined_call_operand.vmem [shape: f32[5], index: 3, kind: input, shape index: {}]   ;;  %s467_s4 = inlined_call_operand.hbm [shape: f32[2,16,128], index: 4, kind: output, shape index: {}]  }
   0x1   :  { %10 = vsyncpa [#allocation5], 0 }
   0x2   :  { %11 = vsyncpa [#allocation4], 0  ;;  %s365_s15 = smov [#allocation2]   ;;  %s34_s19 = sshll.u32 %s466_s3, 4  ;;  %s35_s19 = int_to_ptr.vmem [resolvable:$true] %s34_s19 }
   0x3   :  { %s17_s16 = sshll.u32 %s365_s15, 4  ;;  %s18_s16 = int_to_ptr.vmem [resolvable:$true] %s17_s16 }
   0x4   :  { %s315_s20 = scalar_lea.vmem %s18_s16, 512  ;;  %p320_p1 = scmp.lt.s32.totalorder %s18_s16, %s18_s16 }
   0x5   :  { %p316_p0 = scmp.ne.s32.totalorder %s18_s16, %s315_s20  ;;  %p321_p2 = scmp.lt.s32.totalorder %s315_s20, %s315_s20 }
   0x7   :  { %p322_p3 = por %p321_p2, %p320_p1 }
   0x9   :  { %p323_p4 = pnand %p322_p3, %p316_p0 }
   0xb   :  { %326 = shalt.err (!%p323_p4)
}
   0xc   :  { %s366_s21 = smov 128   ;;  %s367_s22 = smov 8  }
   0xd   :  { %23 = dma.hbm_to_vmem [thread:$0]  %s463_s0, 512, %s18_s16, [#allocation3], %s366_s21, %s366_s21, %s367_s22  }
   0xe   :  { %s327_s25 = scalar_lea.vmem %s35_s19, 16  ;;  %p332_p6 = scmp.lt.s32.totalorder %s35_s19, %s35_s19 }
   0xf   :  { %p328_p5 = scmp.ne.s32.totalorder %s35_s19, %s327_s25  ;;  %p333_p7 = scmp.lt.s32.totalorder %s327_s25, %s327_s25 }
  0x11   :  { %p334_p8 = por %p333_p7, %p332_p6 }
  0x13   :  { %p335_p9 = pnand %p334_p8, %p328_p5 }
  0x15   :  { %338 = shalt.err (!%p335_p9)
}
  0x16   :  { %s368_s3 = smov [#allocation6]  }
  0x17   :  { %37 = dma.vmem_to_smem %s35_s19, 16, %s368_s3, [#allocation5]  }
  0x18   :  { %359 = dma.done.wait [#allocation3], 512  }
  0x19   :  { %360 = vsyncadd [#allocation3], 4294966784 }
  0x1a   :  { %361 = dma.done.wait [#allocation5], 16  }
  0x1b   :  { %362 = vsyncadd [#allocation5], 4294967280 }
  0x1c   :  { %44 = sfence }
  0x1d   :  { %v51_v0 = vld [vmem:[%s464_s1] sm:$0x1]  ;;  %v369_v1 = vmov 0   ;;  %v52_v3 = vld [vmem:[%s464_s1 + $0x1] sm:$0x1]  ;;  %v49_v5 = vlaneseq  ;;  %v428_v14 = vld [vmem:[#allocation2 + $0x8] sm:$0xff] }
  0x1e   :  { %301 = vset.pattern.permute.xlu0 %v369_v1  ;;  %302 = vset.pattern.permute.xlu1 %v369_v1  ;;  %v85_v2 = vld [vmem:[%s465_s2] sm:$0x1]  ;;  %v86_v4 = vld [vmem:[%s465_s2 + $0x1] sm:$0x1]  ;;  %v370_v8 = vmov 1966171168  }
  0x1f   :  { %54 = vperm.xlu0 %301, %v51_v0   ;;  %89 = vperm.xlu1 %302, %v85_v2   ;;  %v422_v6 = vshrl.u32 %v49_v5, 7  ;;  %v109_v9 = vunpack.c.l.s4 %v370_v8  ;;  %v50_v10 = vand.u32 127, %v49_v5  ;;  %v430_v15 = vld [vmem:[#allocation2] sm:$0xff]  ;;  %v436_v23 = vld [vmem:[#allocation2 + $0x10] sm:$0xff]  ;;  %v441_v28 = vld [vmem:[#allocation2 + $0x18] sm:$0xff]  ;;  %s286_s1 = sld [smem:[#allocation6 + $0x2]] }
  0x20   :  { %s285_s2 = sld [smem:[#allocation6 + $0x1]]  ;;  %vm178_vm2 = vcmask 146512   ;;  %vm189_vm3 = vcmask 1041409   ;;  %vm192_vm4 = vcmask 15360   ;;  %vm194_vm5 = vcmask 146432   ;;  %s371_s9 = smov 126  }
  0x21   :  { %v425_v7 = vsub.s32 0, %v422_v6  ;;  %v110_v16 = vunpack.c.0.s8 %v109_v9  ;;  %v135_v33 = vsub.s32 1, %v422_v6  ;;  %v173_v47 = vadd.s32 4294967286, %v50_v10  ;;  %s288_s7 = sld [smem:[#allocation6 + $0x4]]  ;;  %s372_s10 = smov 127  }
  0x22   :  { %v168_v49 = vadd.s32 4294967294, %v50_v10  ;;  %s287_s8 = sld [smem:[#allocation6 + $0x3]]  ;;  %s373_s11 = smov 124  }
  0x23   :  { %61 = vperm.xlu0 %301, %v52_v3   ;;  %98 = vperm.xlu1 %302, %v86_v4   ;;  %v113_v25 = vsub.s32 %v110_v16, %v422_v6  ;;  %v176_v50 = vsub.s32 %v173_v47, %v422_v6  ;;  %s374_s12 = smov 125   ;;  %s196_s13 = sld [smem:[#allocation6]] }
  0x24   :  { %v171_v52 = vsub.s32 %v168_v49, %v422_v6  ;;  %s375_s14 = smov [#allocation7]  }
  0x25   :  { %v208_v62 = vstv %s286_s1  ;;  %s272_s15 = sshll.u32 %s375_s14, 4  ;;  %s273_s15 = int_to_ptr.vmem [resolvable:$true] %s272_s15 }
  0x26   :  { %v200_v63 = vstv %s285_s2  ;;  %s339_s16 = scalar_lea.vmem %s273_s15, 512  ;;  %p344_p11 = scmp.lt.s32.totalorder %s273_s15, %s273_s15 }
  0x27   :  { %v224_v4 = vstv %s288_s7  ;;  %p340_p10 = scmp.ne.s32.totalorder %s273_s15, %s339_s16  ;;  %p345_p12 = scmp.lt.s32.totalorder %s339_s16, %s339_s16 }
  0x28   :  { %v216_v5 = vstv %s287_s8 }
  0x29   :  { %p346_p13 = por %p345_p12, %p344_p11 }
  0x2b   :  { %p347_p0 = pnand %p346_p13, %p340_p10 }
  0x9a   :  { %v55_v11 = vpop.permute.xlu0 %54  ;;  %v90_v12 = vpop.permute.xlu1 %89 }
  0x9b   :  { %v59_v13 = vrot.slane %v55_v11, %v425_v7  ;;  %v95_v17 = vrot.slane %v90_v12, %v425_v7 }
  0x9d   :  { %vm67_vm0 = vcmp.lt.s32.totalorder %v50_v10, %v59_v13 }
  0x9e   :  { %v62_v18 = vpop.permute.xlu0 %61  ;;  %v74_v19 = vsel %vm67_vm0, %v428_v14, 0.0  ;;  %v73_v20 = vsel %vm67_vm0, %v430_v15, 0.0  ;;  %v99_v21 = vpop.permute.xlu1 %98 }
  0x9f   :  { %v66_v22 = vrot.slane %v62_v18, %v425_v7  ;;  %79 = vadd.xlane.f32.xlu1 %v74_v19  ;;  %77 = vadd.xlane.f32.xlu0 %v73_v20  ;;  %v104_v24 = vrot.slane %v99_v21, %v425_v7 }
  0xa1   :  { %vm68_vm1 = vcmp.lt.s32.totalorder %v50_v10, %v66_v22  ;;  %v107_v26 = vcombine.low %v95_v17, %v104_v24  ;;  %v197_v10 = vstv %s196_s13 }
  0xa2   :  { %v75_v27 = vsel %vm68_vm1, %v436_v23, 0.0  ;;  %v76_v30 = vsel %vm68_vm1, %v441_v28, 0.0 }
  0xa3   :  { %81 = vadd.xlane.f32.xlu0 %v75_v27  ;;  %v114_v29 = vrot.slane %v107_v26, %v113_v25 }
  0xa5   :  { %v121_v31 = vrot.slane %v114_v29, %v113_v25 }
  0xa7   :  { %83 = vadd.xlane.f32.xlu0 %v76_v30  ;;  %v125_v32 = vrot.slane %v121_v31, %v425_v7  ;;  %v136_v34 = vrot.slane %v121_v31, %v135_v33 }
  0xb0   :  { %127 = vbcast.lane.b32.xlu1 %v125_v32, 256 }
  0xb4   :  { %138 = vbcast.lane.b32.xlu1 %v136_v34, 256 }
  0xb8   :  { %142 = vbcast.lane.b32.xlu1 %v136_v34, 264 }
  0xbd   :  { %131 = vbcast.lane.b32.xlu0 %v125_v32, 264 }
 0x128   :  { %v80_v35 = vpop.xlane.xlu1 %79  ;;  %v78_v36 = vpop.xlane.xlu0 %77 }
 0x12c   :  { %v128_v37 = vpop.permute.xlu1 %127  ;;  %v82_v38 = vpop.xlane.xlu0 %81 }
 0x12d   :  { %v148_v39 = vmul.f32 %v128_v37, %v78_v36 }
 0x12f   :  { %157 = vperm.xlu0 %301, %v148_v39  }
 0x130   :  { %v139_v40 = vpop.permute.xlu1 %138  ;;  %v84_v41 = vpop.xlane.xlu0 %83 }
 0x131   :  { %v150_v42 = vmul.f32 %v139_v40, %v82_v38 }
 0x133   :  { %163 = vperm.xlu0 %301, %v150_v42  }
 0x134   :  { %v132_v43 = vpop.permute.xlu0 %131  ;;  %v143_v45 = vpop.permute.xlu1 %142 }
 0x135   :  { %v149_v44 = vmul.f32 %v132_v43, %v80_v35  ;;  %v151_v46 = vmul.f32 %v143_v45, %v84_v41 }
 0x137   :  { %160 = vperm.xlu1 %302, %v149_v44  }
 0x13b   :  { %166 = vperm.xlu1 %302, %v151_v46  }
 0x1aa   :  { %v158_v48 = vpop.permute.xlu0 %157 }
 0x1ab   :  { %v172_v56 = vrot.slane %v158_v48, %v171_v52 }
 0x1ae   :  { %v164_v53 = vpop.permute.xlu0 %163 }
 0x1af   :  { %v183_v57 = vrot.slane %v164_v53, %v171_v52 }
 0x1b2   :  { %v161_v51 = vpop.permute.xlu1 %160 }
 0x1b3   :  { %v177_v54 = vrot.slane %v161_v51, %v176_v50 }
 0x1b5   :  { %v179_v59 = vsel %vm178_vm2, %v177_v54, %v172_v56 }
 0x1b6   :  { %v167_v55 = vpop.permute.xlu1 %166 }
 0x1b7   :  { %v187_v58 = vrot.slane %v167_v55, %v176_v50 }
 0x1b9   :  { %v188_v60 = vsel %vm178_vm2, %v187_v58, %v183_v57 }
 0x1ba   :  { %v190_v61 = vsel %vm189_vm3, %v188_v60, %v179_v59 }
 0x1bb   :  { %v193_v0 = vsel %vm192_vm4, 0.0, %v190_v61 }
 0x1bc   :  { %v195_v1 = vsel %vm194_vm5, %v193_v0, 0.0 }
 0x1bd   :  { %v209_v2 = vmul.f32 %v208_v62, %v195_v1  ;;  %v201_v3 = vmul.f32 %v200_v63, %v195_v1  ;;  %v225_v8 = vmul.f32 %v224_v4, %v195_v1  ;;  %v217_v9 = vmul.f32 %v216_v5, %v195_v1 }
 0x1be   :  { %v198_v11 = vmul.f32 %v197_v10, %v195_v1 }
 0x1bf   :  { %211 = vrot.lane.b32.xlu1 %v209_v2, %s371_s9  ;;  %203 = vrot.lane.b32.xlu0 %v201_v3, %s372_s10 }
 0x1c3   :  { %227 = vrot.lane.b32.xlu1 %v225_v8, %s373_s11  ;;  %219 = vrot.lane.b32.xlu0 %v217_v9, %s374_s12 }
 0x231   :  { %v212_v12 = vpop.permute.xlu1 %211  ;;  %v204_v13 = vpop.permute.xlu0 %203 }
 0x232   :  { %v206_v16 = vadd.f32 %v204_v13, %v198_v11 }
 0x234   :  { %v214_v17 = vadd.f32 %v212_v12, %v206_v16 }
 0x235   :  { %v220_v18 = vpop.permute.xlu0 %219  ;;  %v228_v20 = vpop.permute.xlu1 %227 }
 0x236   :  { %v222_v19 = vadd.f32 %v220_v18, %v214_v17 }
 0x238   :  { %v230_v21 = vadd.f32 %v228_v20, %v222_v19 }
 0x23a   :  { %v289_v22 = vmul.f32 -1.442695, %v230_v21 }
 0x23c   :  { %303 = vpow2.f32 %v289_v22 }
 0x249   :  { %v304_v24 = vpop.eup %303 }
 0x24a   :  { %v234_v25 = vadd.f32 1.0, %v304_v24 }
 0x24c   :  { %305 = vrcp.f32 %v234_v25 }
 0x259   :  { %v306_v26 = vpop.eup %305 }
 0x25a   :  { %v240_v27 = vrot.slane %v306_v26, %v425_v7  ;;  %v251_v29 = vrot.slane %v306_v26, %v135_v33 }
 0x25c   :  { %246 = vbcast.lane.b32.xlu1 %v240_v27, 264  ;;  %242 = vbcast.lane.b32.xlu0 %v240_v27, 256 }
 0x260   :  { %257 = vbcast.lane.b32.xlu1 %v251_v29, 264  ;;  %253 = vbcast.lane.b32.xlu0 %v251_v29, 256 }
 0x2ce   :  { %v247_v30 = vpop.permute.xlu1 %246  ;;  %v243_v31 = vpop.permute.xlu0 %242 }
 0x2cf   :  { %v260_v32 = vmul.f32 %v247_v30, %v428_v14  ;;  %v259_v34 = vmul.f32 %v243_v31, %v430_v15 }
 0x2d1   :  { %264 = vst [vmem:[#allocation7 + $0x8] sm:$0xff] %v260_v32  ;;  %263 = vst [vmem:[#allocation7] sm:$0xff] %v259_v34 }
 0x2d2   :  { %v258_v35 = vpop.permute.xlu1 %257  ;;  %v254_v36 = vpop.permute.xlu0 %253 }
 0x2d3   :  { %v262_v7 = vmul.f32 %v258_v35, %v441_v28  ;;  %v261_v37 = vmul.f32 %v254_v36, %v436_v23 }
 0x2d5   :  { %266 = vst [vmem:[#allocation7 + $0x18] sm:$0xff] %v262_v7  ;;  %265 = vst [vmem:[#allocation7 + $0x10] sm:$0xff] %v261_v37 }
 0x2d6   :  { %350 = shalt.err (!%p347_p0)
}
 0x2d7   :  { %278 = dma.vmem_to_hbm [thread:$0]  %s273_s15, 512, %s467_s4, [#allocation4], %s366_s21, %s366_s21, %s367_s22  }
 0x2d8   :  { %363 = dma.done.wait [#allocation4], 512  }
 0x2d9   :  { %364 = vsyncadd [#allocation4], 4294966784 }
 0x2da   :  { %282 = vsyncpa [#allocation3], 1 }
 0x2db   :  { %283 = vsyncpa [#allocation4], 1 }
 0x2dc   :  { %284 = vsyncpa [#allocation5], 1 }

</bundles_post_ra>
